<compile_context>
chip_gen: v7x
topology: tpu7x:2x2x1
jax: 0.10.0
libtpu: 0.0.40
codegen_flags: <defaults>
</compile_context>

<pallas_src>
import jax
import jax.numpy as jnp
from jax.experimental import pallas as pl
from jax.experimental.pallas import tpu as pltpu

EPS = 1e-10
_LANE = 128
_MAX_HW_TILE = 2048              # sweep range 512-2048 per perf guidance
_BLOCK_BYTES_BUDGET = 2 << 20    # ~2 MiB per (C, hw_tile) f32 block (x2 arrays x2 bufs ~ 8 MiB)
_BATCH_BYTES_BUDGET = 2 << 20    # target bytes per grid step before batching N


def _round_up(a, b):
    return ((a + b - 1) // b) * b


def _l2norm_kernel(x_ref, w_ref, o_ref):
    # x_ref: (bN, C, hwT)   w_ref: (1, C, 1) fp32   o_ref: (bN, C, hwT)
    xf = x_ref[...].astype(jnp.float32)
    # norm = sqrt(sum_c x^2) + eps  (eps added AFTER sqrt, matching PyTorch)
    sumsq = jnp.sum(xf * xf, axis=1, keepdims=True)
    # EUP reciprocal: turns C*HW divides into multiplies; reciprocal rides the
    # separate EUP VLIW slot (effectively free on this HBM-bound kernel).
    inv = pl.reciprocal(jnp.sqrt(sumsq) + EPS, approx=True)
    o_ref[...] = (w_ref[...] * (xf * inv)).astype(o_ref.dtype)


def _choose_tiles(N, C, HW, itemsize):
    # Spatial tile: multiple of 128, capped by a per-block VMEM byte budget.
    cap = max(_LANE, min(_MAX_HW_TILE,
                         (_BLOCK_BYTES_BUDGET // max(C * 4, 1)) // _LANE * _LANE))
    hw_min = _round_up(HW, _LANE)
    if hw_min <= cap:
        hw_tile, hw_pad = hw_min, hw_min
    else:
        hw_tile, hw_pad = cap, _round_up(HW, cap)
    # Batch tile: amortize per-grid-step overhead when C*HW per sample is tiny.
    per_n = C * hw_tile * max(itemsize, 4)
    b_tile = max(1, min(N, _BATCH_BYTES_BUDGET // max(per_n, 1)))
    while N % b_tile:                      # keep blocks exact (no partial batch tail)
        b_tile -= 1
    return b_tile, hw_tile, hw_pad


def l2norm(x, weight):
    """x: (N, C, H, W); weight: (C,) per-channel scale (kept in fp32)."""
    N, C, H, W = x.shape
    HW = H * W
    b_tile, hw_tile, hw_pad = _choose_tiles(N, C, HW, jnp.dtype(x.dtype).itemsize)

    x3 = x.reshape(N, C, HW)
    if hw_pad != HW:
        # Pad so every lane tile is dense (unmasked vst). Padded lanes have
        # x = 0 -> 0 * (1/eps) = 0; they are sliced away below.
        x3 = jnp.pad(x3, ((0, 0), (0, 0), (0, hw_pad - HW)))
    w3 = weight.reshape(1, C, 1).astype(jnp.float32)   # weight stays fp32 (PyTorch semantics)

    grid = (N // b_tile, hw_pad // hw_tile)
    out = pl.pallas_call(
        _l2norm_kernel,
        out_shape=jax.ShapeDtypeStruct((N, C, hw_pad), x.dtype),
        grid_spec=pltpu.PrefetchScalarGridSpec(
            num_scalar_prefetch=0,
            grid=grid,
            in_specs=[
                pl.BlockSpec((b_tile, C, hw_tile), lambda n, s: (n, 0, s)),
                pl.BlockSpec((1, C, 1), lambda n, s: (0, 0, 0)),
            ],
            out_specs=pl.BlockSpec((b_tile, C, hw_tile), lambda n, s: (n, 0, s)),
        ),
        compiler_params=pltpu.CompilerParams(
            dimension_semantics=("parallel", "parallel"),
        ),
    )(x3, w3)

    if hw_pad != HW:
        out = out[:, :, :HW]
    return out.reshape(N, C, H, W)


def l2norm_ref(x, weight):
    # Pure-JAX reference mirroring the PyTorch forward.
    norm = jnp.sqrt(jnp.sum(x.astype(jnp.float32) ** 2, axis=1, keepdims=True)) + EPS
    return (weight.reshape(1, -1, 1, 1) * (x / norm)).astype(x.dtype)


if __name__ == "__main__":
    key = jax.random.PRNGKey(0)
    N, C, H, W = 2, 4, 16, 16
    scale = 20.0  # L2Norm(n_channels=C, scale=20) -> weight init'd to 20.0

    x = jax.random.normal(key, (N, C, H, W), dtype=jnp.float32)
    weight = jnp.full((C,), scale, dtype=jnp.float32)  # init.constant_(weight, gamma)

    out = jax.block_until_ready(l2norm(x, weight))
    ref = l2norm_ref(x, weight)

    assert out.shape == (N, C, H, W)
    # Tolerance accommodates the approximate EUP reciprocal (pl.reciprocal approx=True).
    assert jnp.allclose(out, ref, atol=1e-2, rtol=1e-2), float(jnp.max(jnp.abs(out - ref)))

    print("KERNEL_OK")
</pallas_src>

<mosaic_0001>
module attributes {stable_mosaic.version = 11 : i64} {
  func.func @_l2norm_kernel(%arg0: i32, %arg1: i32, %arg2: memref<2x4x256xf32, #tpu.memory_space<vmem>>, %arg3: memref<1x4x1xf32, #tpu.memory_space<vmem>>, %arg4: memref<2x4x256xf32, #tpu.memory_space<vmem>>) attributes {dimension_semantics = [#tpu.dimension_semantics<parallel>, #tpu.dimension_semantics<parallel>], iteration_bounds = array<i64: 1, 1>, scalar_prefetch = 0 : i64, scratch_operands = 0 : i64, tpu.core_type = #tpu.core_type<tc>, window_params = [{transform_indices = @transform_0, window_bounds = array<i64: 2, 4, 256>}, {pipeline_mode = #tpu.pipeline_mode<synchronous>, transform_indices = @transform_1, window_bounds = array<i64: 1, 4, 1>}, {transform_indices = @transform_2, window_bounds = array<i64: 2, 4, 256>}]} {
    %c0 = arith.constant 0 : index
    %c0_0 = arith.constant 0 : index
    %c0_1 = arith.constant 0 : index
    %0 = vector.load %arg2[%c0, %c0_0, %c0_1] : memref<2x4x256xf32, #tpu.memory_space<vmem>>, vector<2x4x256xf32>
    %1 = arith.mulf %0, %0 : vector<2x4x256xf32>
    %cst = arith.constant dense<0.000000e+00> : vector<2x256xf32>
    %2 = vector.multi_reduction <add>, %1, %cst [1] : vector<2x4x256xf32> to vector<2x256xf32>
    %3 = vector.shape_cast %2 : vector<2x256xf32> to vector<2x1x256xf32>
    %4 = math.sqrt %3 : vector<2x1x256xf32>
    %cst_2 = arith.constant 1.000000e-10 : f32
    %5 = vector.broadcast %cst_2 : f32 to vector<2x1x256xf32>
    %6 = arith.addf %4, %5 : vector<2x1x256xf32>
    %7 = tpu.reciprocal %6 {approx = true} : vector<2x1x256xf32> -> vector<2x1x256xf32>
    %c0_3 = arith.constant 0 : index
    %c0_4 = arith.constant 0 : index
    %c0_5 = arith.constant 0 : index
    %8 = vector.load %arg3[%c0_3, %c0_4, %c0_5] : memref<1x4x1xf32, #tpu.memory_space<vmem>>, vector<1x4x1xf32>
    %9 = vector.broadcast %7 : vector<2x1x256xf32> to vector<2x4x256xf32>
    %10 = arith.mulf %0, %9 : vector<2x4x256xf32>
    %11 = vector.broadcast %8 : vector<1x4x1xf32> to vector<2x4x256xf32>
    %12 = arith.mulf %11, %10 : vector<2x4x256xf32>
    %c0_6 = arith.constant 0 : index
    %c0_7 = arith.constant 0 : index
    %c0_8 = arith.constant 0 : index
    %13 = vector.load %arg4[%c0_6, %c0_7, %c0_8] : memref<2x4x256xf32, #tpu.memory_space<vmem>>, vector<2x4x256xf32>
    tpu.vector_store %arg4[%c0_6, %c0_7, %c0_8], %12 {strides = array<i32>} : memref<2x4x256xf32, #tpu.memory_space<vmem>>, vector<2x4x256xf32>,
    return
  }
  func.func @transform_0(%arg0: i32, %arg1: i32) -> (i32, i32, i32) {
    %c0_i32 = arith.constant 0 : i32
    %c0_i32_0 = arith.constant 0 : i32
    return %arg0, %c0_i32, %arg1 : i32, i32, i32
  }
  func.func @transform_1(%arg0: i32, %arg1: i32) -> (i32, i32, i32) {
    %c0_i32 = arith.constant 0 : i32
    %c0_i32_0 = arith.constant 0 : i32
    %c0_i32_1 = arith.constant 0 : i32
    %c0_i32_2 = arith.constant 0 : i32
    return %c0_i32, %c0_i32_0, %c0_i32_1 : i32, i32, i32
  }
  func.func @transform_2(%arg0: i32, %arg1: i32) -> (i32, i32, i32) {
    %c0_i32 = arith.constant 0 : i32
    %c0_i32_0 = arith.constant 0 : i32
    return %arg0, %c0_i32, %arg1 : i32, i32, i32
  }
}

</mosaic_0001>

<bundles_post_ra>
// kernel: tpu_custom_call.1
= control target key start
LH: loop header
LB: loop body
LE: loop exit
PB: predicated region body
PF: predicated region fallthrough
CT: control target
= control target key end

     0   :  { %7 = vsyncpa [#allocation3], 0  ;;  %s287_s0 = inlined_call_operand.hbm [shape: f32[2,4,256], index: 0, kind: input, shape index: {}]   ;;  %s288_s1 = inlined_call_operand.vmem [shape: f32[1,4,1], index: 1, kind: input, shape index: {}]   ;;  %s289_s2 = inlined_call_operand.hbm [shape: f32[2,4,256], index: 2, kind: output, shape index: {}]  }
   0x1   :  { %8 = vsyncpa [#allocation4], 0  ;;  %s224_s9 = smov [#allocation2]   ;;  %s176_s13 = scalar_lea.hbm %s287_s0, 256 }
   0x2   :  { %s14_s10 = sshll.u32 %s224_s9, 4  ;;  %p177_p0 = scmp.ne.s32.totalorder %s287_s0, %s176_s13  ;;  %s15_s10 = int_to_ptr.vmem [resolvable:$true] %s14_s10 }
   0x3   :  { %p180_p1 = scmp.lt.u32.totalorder %s176_s13, %s287_s0 }
   0x5   :  { %p182_p2 = pnand %p180_p1, %p177_p0 }
   0x7   :  { %185 = shalt.err (!%p182_p2)
}
   0x8   :  { %s186_s18 = scalar_lea.vmem %s15_s10, 256  ;;  %p191_p4 = scmp.lt.s32.totalorder %s15_s10, %s15_s10 }
   0x9   :  { %p187_p3 = scmp.ne.s32.totalorder %s15_s10, %s186_s18  ;;  %p192_p5 = scmp.lt.s32.totalorder %s186_s18, %s186_s18 }
   0xb   :  { %p193_p6 = por %p192_p5, %p191_p4 }
   0xd   :  { %p194_p7 = pnand %p193_p6, %p187_p3 }
   0xf   :  { %197 = shalt.err (!%p194_p7)
}
  0x10   :  { %s225_s19 = smov 128   ;;  %s226_s20 = smov 8  }
  0x11   :  { %20 = dma.hbm_to_vmem [thread:$0]  %s287_s0, 256, %s15_s10, [#allocation3], %s225_s19, %s225_s19, %s226_s20  }
  0x12   :  { %220 = dma.done.wait [#allocation3], 256  }
  0x13   :  { %221 = vsyncadd [#allocation3], 4294967040  ;;  %v227_v0 = vmov 0   ;;  %v101_v1 = vld [vmem:[%s288_s1] sm:$0xf]  ;;  %v264_v3 = vld [vmem:[#allocation2 + $0x8] sm:$0xff] }
  0x14   :  { %159 = vset.pattern.permute.xlu0 %v227_v0  ;;  %v262_v2 = vld [vmem:[#allocation2] sm:$0xff]  ;;  %v29_v5 = vmul.f32 %v264_v3, %v264_v3  ;;  %vm36_vm0 = vcmask 1043456   ;;  %s228_s0 = smov [#allocation5]  }
  0x15   :  { %114 = vperm.xlu0 %159, %v101_v1   ;;  %v28_v4 = vmul.f32 %v262_v2, %v262_v2  ;;  %s142_s1 = sshll.u32 %s228_s0, 4  ;;  %s143_s1 = int_to_ptr.vmem [resolvable:$true] %s142_s1 }
  0x16   :  { %v33_v7 = vcombine.high %v29_v5, %v29_v5  ;;  %v51_v9 = vsel %vm36_vm0, %v29_v5, 0.0  ;;  %s198_s25 = scalar_lea.vmem %s143_s1, 256  ;;  %p203_p9 = scmp.lt.s32.totalorder %s143_s1, %s143_s1 }
  0x17   :  { %v32_v6 = vcombine.high %v28_v4, %v28_v4  ;;  %v37_v8 = vsel %vm36_vm0, %v28_v4, 0.0  ;;  %v52_v13 = vrot.slane %v51_v9, 4  ;;  %p199_p8 = scmp.ne.s32.totalorder %s143_s1, %s198_s25  ;;  %p204_p10 = scmp.lt.s32.totalorder %s198_s25, %s198_s25 }
  0x18   :  { %v38_v11 = vrot.slane %v37_v8, 4  ;;  %v58_v12 = vsel %vm36_vm0, %v33_v7, 0.0 }
  0x19   :  { %v44_v10 = vsel %vm36_vm0, %v32_v6, 0.0  ;;  %v59_v15 = vrot.slane %v58_v12, 4  ;;  %v53_v17 = vadd.f32 %v52_v13, %v51_v9  ;;  %p205_p11 = por %p204_p10, %p203_p9 }
  0x1a   :  { %v45_v14 = vrot.slane %v44_v10, 4  ;;  %v39_v16 = vadd.f32 %v38_v11, %v37_v8 }
  0x1b   :  { %v60_v19 = vadd.f32 %v59_v15, %v58_v12  ;;  %v54_v21 = vrot.slane %v53_v17, 2  ;;  %p206_p12 = pnand %p205_p11, %p199_p8 }
  0x1c   :  { %v46_v18 = vadd.f32 %v45_v14, %v44_v10  ;;  %v40_v20 = vrot.slane %v39_v16, 2 }
  0x1d   :  { %v61_v23 = vrot.slane %v60_v19, 2  ;;  %v55_v25 = vadd.f32 %v54_v21, %v53_v17 }
  0x1e   :  { %v47_v22 = vrot.slane %v46_v18, 2  ;;  %v41_v24 = vadd.f32 %v40_v20, %v39_v16 }
  0x1f   :  { %v62_v27 = vadd.f32 %v61_v23, %v60_v19  ;;  %v56_v29 = vrot.slane %v55_v25, 1 }
  0x20   :  { %v48_v26 = vadd.f32 %v47_v22, %v46_v18  ;;  %v42_v28 = vrot.slane %v41_v24, 1 }
  0x21   :  { %v63_v31 = vrot.slane %v62_v27, 1  ;;  %v57_v33 = vadd.f32 %v56_v29, %v55_v25 }
  0x22   :  { %v49_v30 = vrot.slane %v48_v26, 1  ;;  %v43_v32 = vadd.f32 %v42_v28, %v41_v24 }
  0x23   :  { %v64_v35 = vadd.f32 %v63_v31, %v62_v27  ;;  %vm81_vm2 = vcmp.eq.f32.partialorder %v57_v33, inf  ;;  %v84_v46 = vand.u32 2147483648, %v57_v33  ;;  %vm83_vm6 = vcmp.eq.f32.partialorder %v57_v33, 0.0 }
  0x24   :  { %v50_v34 = vadd.f32 %v49_v30, %v48_v26  ;;  %160 = vrsqrt.f32 %v43_v32  ;;  %vm67_vm1 = vcmp.eq.f32.partialorder %v43_v32, inf  ;;  %v70_v43 = vand.u32 2147483648, %v43_v32 }
  0x25   :  { %162 = vrsqrt.f32 %v57_v33  ;;  %vm69_vm4 = vcmp.eq.f32.partialorder %v43_v32, 0.0  ;;  %vm88_vm5 = vcmp.eq.f32.partialorder %v64_v35, inf  ;;  %v91_v50 = vand.u32 2147483648, %v64_v35 }
  0x26   :  { %164 = vrsqrt.f32 %v50_v34  ;;  %vm74_vm3 = vcmp.eq.f32.partialorder %v50_v34, inf  ;;  %v77_v47 = vand.u32 2147483648, %v50_v34  ;;  %vm76_vm7 = vcmp.eq.f32.partialorder %v50_v34, 0.0 }
  0x27   :  { %166 = vrsqrt.f32 %v64_v35  ;;  %vm90_vm8 = vcmp.eq.f32.partialorder %v64_v35, 0.0 }
  0x2e   :  { %v161_v36 = vpop.eup %160 }
  0x2f   :  { %v163_v37 = vpop.eup %162  ;;  %v66_v40 = vmul.f32 %v161_v36, %v43_v32 }
  0x30   :  { %v165_v38 = vpop.eup %164  ;;  %v80_v41 = vmul.f32 %v163_v37, %v57_v33 }
  0x31   :  { %v167_v39 = vpop.eup %166  ;;  %v73_v42 = vmul.f32 %v165_v38, %v50_v34  ;;  %v68_v45 = vsel %vm67_vm1, %v43_v32, %v66_v40 }
  0x32   :  { %v87_v44 = vmul.f32 %v167_v39, %v64_v35  ;;  %v82_v48 = vsel %vm81_vm2, %v57_v33, %v80_v41  ;;  %v71_v51 = vsel %vm69_vm4, %v70_v43, %v68_v45 }
  0x33   :  { %v75_v49 = vsel %vm74_vm3, %v50_v34, %v73_v42  ;;  %v85_v53 = vsel %vm83_vm6, %v84_v46, %v82_v48  ;;  %v93_v56 = vadd.f32 1e-10, %v71_v51 }
  0x34   :  { %v89_v52 = vsel %vm88_vm5, %v64_v35, %v87_v44  ;;  %v78_v54 = vsel %vm76_vm7, %v77_v47, %v75_v49  ;;  %v95_v57 = vadd.f32 1e-10, %v85_v53 }
  0x35   :  { %v92_v55 = vsel %vm90_vm8, %v91_v50, %v89_v52  ;;  %v94_v58 = vadd.f32 1e-10, %v78_v54  ;;  %168 = vrcp.f32 %v93_v56 }
  0x36   :  { %v96_v59 = vadd.f32 1e-10, %v92_v55  ;;  %170 = vrcp.f32 %v95_v57 }
  0x37   :  { %172 = vrcp.f32 %v94_v58 }
  0x38   :  { %174 = vrcp.f32 %v96_v59 }
  0x3f   :  { %v169_v60 = vpop.eup %168 }
  0x40   :  { %v171_v61 = vpop.eup %170 }
  0x41   :  { %v173_v62 = vpop.eup %172 }
  0x42   :  { %v175_v63 = vpop.eup %174  ;;  %v106_v0 = vcombine.low %v169_v60, %v173_v62 }
  0x43   :  { %v107_v1 = vcombine.low %v171_v61, %v175_v63 }
  0x44   :  { %v110_v4 = vmul.f32 %v106_v0, %v262_v2 }
  0x45   :  { %v111_v5 = vmul.f32 %v107_v1, %v264_v3 }
  0x46   :  { %v119_v6 = vcombine.high %v110_v4, %v110_v4 }
  0x47   :  { %v120_v7 = vcombine.high %v111_v5, %v111_v5 }
  0x94   :  { %v115_v8 = vpop.permute.xlu0 %114 }
  0x95   :  { %v123_v9 = vmul.f32 %v115_v8, %v110_v4  ;;  %v124_v10 = vmul.f32 %v119_v6, %v115_v8  ;;  %v125_v11 = vmul.f32 %v115_v8, %v111_v5  ;;  %v126_v12 = vmul.f32 %v120_v7, %v115_v8 }
  0x97   :  { %v131_v13 = vcombine.low %v123_v9, %v124_v10  ;;  %v132_v14 = vcombine.low %v125_v11, %v126_v12 }
  0x99   :  { %135 = vst [vmem:[#allocation5] sm:$0xff] %v131_v13  ;;  %136 = vst [vmem:[#allocation5 + $0x8] sm:$0xff] %v132_v14 }
  0x9a   :  { %209 = shalt.err (!%p206_p12)
}
  0x9b   :  { %s210_s28 = scalar_lea.hbm %s289_s2, 256 }
  0x9c   :  { %p211_p13 = scmp.ne.s32.totalorder %s289_s2, %s210_s28  ;;  %p214_p0 = scmp.lt.u32.totalorder %s210_s28, %s289_s2 }
  0x9e   :  { %p216_p1 = pnand %p214_p0, %p211_p13 }
  0xa0   :  { %219 = shalt.err (!%p216_p1)
}
  0xa1   :  { %148 = dma.vmem_to_hbm [thread:$0]  %s143_s1, 256, %s289_s2, [#allocation4], %s225_s19, %s225_s19, %s226_s20  }
  0xa2   :  { %222 = dma.done.wait [#allocation4], 256  }
  0xa3   :  { %223 = vsyncadd [#allocation4], 4294967040 }
  0xa4   :  { %152 = vsyncpa [#allocation3], 1 }
  0xa5   :  { %153 = vsyncpa [#allocation4], 1 }

</bundles_post_ra>
